<compile_context>
chip_gen: v5e
topology: v5e:2x2
jax: 0.10.0
libtpu: 0.0.40
codegen_flags: <defaults>
</compile_context>

<pallas_src>
import math

import jax
import jax.numpy as jnp
from jax import lax
from jax.experimental import pallas as pl
from jax.experimental.pallas import tpu as pltpu


def _kernel(x_ref, w_gates_ref, w_qkv_ref, b_qkv_ref, w_of_ref, b_of_ref, out_ref):
    x = x_ref[...]                                              # (B, Dp)  (ones col folded in)

    # ---- LSTM single step (h0 = c0 = 0); f-gate dropped, biases folded into W ----
    i_g = jax.nn.sigmoid(jnp.dot(x, w_gates_ref[0], preferred_element_type=jnp.float32))
    g_g = jnp.tanh(jnp.dot(x, w_gates_ref[1], preferred_element_type=jnp.float32))
    o_g = jax.nn.sigmoid(jnp.dot(x, w_gates_ref[2], preferred_element_type=jnp.float32))
    h = o_g * jnp.tanh(i_g * g_g)                               # (B, H)

    # ---- single-head attention over the B positions (N=1 quirk of the module) ----
    # 1/sqrt(H) is pre-folded into the q weight/bias.
    q = jnp.dot(h, w_qkv_ref[0], preferred_element_type=jnp.float32) + b_qkv_ref[0:1, :]
    k = jnp.dot(h, w_qkv_ref[1], preferred_element_type=jnp.float32) + b_qkv_ref[1:2, :]
    v = jnp.dot(h, w_qkv_ref[2], preferred_element_type=jnp.float32) + b_qkv_ref[2:3, :]

    # q @ k^T without materializing a transposed k tile.
    scores = lax.dot_general(q, k, (((1,), (1,)), ((), ())),
                             preferred_element_type=jnp.float32)        # (B, B)
    scores = scores - jnp.max(scores, axis=-1, keepdims=True)
    e = jnp.exp(scores)
    attn_w = e / jnp.sum(e, axis=-1, keepdims=True)             # exact divide: cheap at (B,1)

    ctx = jnp.dot(attn_w, v, preferred_element_type=jnp.float32)        # (B, H)

    # ---- fused out_proj + fc (both linear, composed exactly in pack_params) ----
    out_ref[...] = jnp.dot(ctx, w_of_ref[...],
                           preferred_element_type=jnp.float32) + b_of_ref[...]


def pack_params(params, input_dim, hidden_dim, num_classes):
    """One-time weight packing.

    NOTE: this bakes in seq_len == 1 and h0 == c0 == 0 (W_hh and the f-gate are
    dropped).  Do NOT reuse for a multi-step LSTM.
    """
    (w_ih, w_hh, b_ih, b_hh, w_in, b_in, w_out, b_out, w_fc, b_fc) = params
    del w_hh  # h0 == 0 -> the W_hh contribution vanishes for a 1-step LSTM
    H, D, C = hidden_dim, input_dim, num_classes

    b_lstm = b_ih + b_hh
    # Contraction dim: D features + 1 bias column, zero-padded to a multiple of 8.
    d_pad = ((D + 1 + 7) // 8) * 8

    # PyTorch LSTM gate order: [i, f, g, o]; f multiplies c0 == 0 -> dropped.
    def gate_slab(idx):
        slab = jnp.zeros((d_pad, H), jnp.float32)
        slab = slab.at[:D, :].set(w_ih[idx * H:(idx + 1) * H].T)   # weight rows
        slab = slab.at[D, :].set(b_lstm[idx * H:(idx + 1) * H])    # bias row (ones col of x)
        return slab

    w_gates = jnp.stack([gate_slab(0), gate_slab(2), gate_slab(3)], axis=0)  # (3, d_pad, H)

    scale = 1.0 / math.sqrt(H)
    w_qkv = jnp.stack([(w_in[0 * H:1 * H] * scale).T,
                       w_in[1 * H:2 * H].T,
                       w_in[2 * H:3 * H].T], axis=0)                          # (3, H, H)
    b_qkv = jnp.zeros((8, H), jnp.float32)                                    # sublane-padded slab
    b_qkv = (b_qkv.at[0].set(b_in[0 * H:1 * H] * scale)
                   .at[1].set(b_in[1 * H:2 * H])
                   .at[2].set(b_in[2 * H:3 * H]))

    # Fuse out_proj (linear) with fc (linear):
    #   out = ((ctx @ Wout.T + bout) @ Wfc.T + bfc)
    #       = ctx @ (Wout.T @ Wfc.T) + (bout @ Wfc.T + bfc)
    w_of = w_out.T @ w_fc.T                                                   # (H, C)
    b_of = (b_out @ w_fc.T + b_fc).reshape(1, C)                              # (1, C)

    return (w_gates, w_qkv, b_qkv, w_of, b_of)


def _forward_impl(x, packed):
    w_gates, w_qkv, b_qkv, w_of, b_of = packed
    B, D = x.shape
    d_pad = w_gates.shape[1]
    C = w_of.shape[1]

    # Append the constant-1 bias column and zero-pad the contraction dim.
    x_aug = (jnp.zeros((B, d_pad), jnp.float32)
             .at[:, :D].set(x)
             .at[:, D].set(1.0))

    vmem = pl.BlockSpec(memory_space=pltpu.MemorySpace.VMEM)
    return pl.pallas_call(
        _kernel,
        out_shape=jax.ShapeDtypeStruct((B, C), jnp.float32),
        in_specs=[vmem] * 6,
        out_specs=vmem,
    )(x_aug, w_gates, w_qkv, b_qkv, w_of, b_of)


lstm_with_attention_forward = jax.jit(_forward_impl)


def _reference_forward(x, params, hidden_dim):
    """Plain-JAX reference mirroring the PyTorch module, for validation."""
    (w_ih, w_hh, b_ih, b_hh, w_in, b_in, w_out, b_out, w_fc, b_fc) = params
    del w_hh
    H = hidden_dim
    gates = x @ w_ih.T + b_ih + b_hh
    i = jax.nn.sigmoid(gates[:, :H])
    g = jnp.tanh(gates[:, 2 * H:3 * H])
    o = jax.nn.sigmoid(gates[:, 3 * H:4 * H])
    h = o * jnp.tanh(i * g)
    qkv = h @ w_in.T + b_in
    q, k, v = qkv[:, :H] / math.sqrt(H), qkv[:, H:2 * H], qkv[:, 2 * H:]
    a = jax.nn.softmax(q @ k.T, axis=-1)
    attn = (a @ v) @ w_out.T + b_out
    return attn @ w_fc.T + b_fc


if __name__ == "__main__":
    # Small shapes consistent with the module's forward.
    B, input_dim, hidden_dim, num_classes = 8, 16, 32, 8

    key = jax.random.PRNGKey(0)
    ks = jax.random.split(key, 12)
    s_lstm = 1.0 / math.sqrt(hidden_dim)

    params = (
        jax.random.uniform(ks[0], (4 * hidden_dim, input_dim), jnp.float32, -s_lstm, s_lstm),   # w_ih
        jax.random.uniform(ks[1], (4 * hidden_dim, hidden_dim), jnp.float32, -s_lstm, s_lstm),  # w_hh
        jax.random.uniform(ks[2], (4 * hidden_dim,), jnp.float32, -s_lstm, s_lstm),             # b_ih
        jax.random.uniform(ks[3], (4 * hidden_dim,), jnp.float32, -s_lstm, s_lstm),             # b_hh
        jax.random.normal(ks[4], (3 * hidden_dim, hidden_dim), jnp.float32) * 0.1,              # in_proj_weight
        jax.random.normal(ks[5], (3 * hidden_dim,), jnp.float32) * 0.1,                         # in_proj_bias
        jax.random.normal(ks[6], (hidden_dim, hidden_dim), jnp.float32) * 0.1,                  # out_proj.weight
        jax.random.normal(ks[7], (hidden_dim,), jnp.float32) * 0.1,                             # out_proj.bias
        jax.random.normal(ks[8], (num_classes, hidden_dim), jnp.float32) * 0.1,                 # fc.weight
        jax.random.uniform(ks[9], (num_classes,), jnp.float32, -0.1, 0.1),                      # fc.bias
    )

    x = jax.random.normal(ks[10], (B, input_dim), jnp.float32)

    # Pack / transpose / fuse weights ONCE (not per call).
    packed = pack_params(params, input_dim, hidden_dim, num_classes)

    out = lstm_with_attention_forward(x, packed)
    out = jax.block_until_ready(out)

    ref = _reference_forward(x, params, hidden_dim)
    assert out.shape == (B, num_classes)
    # Softmax uses the exact divide; remaining differences are f32 rounding from
    # the folded biases and the exact linear fusion of out_proj with fc.
    assert jnp.allclose(out, ref, rtol=1e-3, atol=1e-5), "mismatch vs reference"

    print("KERNEL_OK")
</pallas_src>

<mosaic_0001>
module attributes {stable_mosaic.version = 11 : i64} {
  func.func @_kernel(%arg0: memref<8x24xf32, #tpu.memory_space<vmem>>, %arg1: memref<3x24x32xf32, #tpu.memory_space<vmem>>, %arg2: memref<3x32x32xf32, #tpu.memory_space<vmem>>, %arg3: memref<8x32xf32, #tpu.memory_space<vmem>>, %arg4: memref<32x8xf32, #tpu.memory_space<vmem>>, %arg5: memref<1x8xf32, #tpu.memory_space<vmem>>, %arg6: memref<8x8xf32, #tpu.memory_space<vmem>>) attributes {dimension_semantics = [], scalar_prefetch = 0 : i64, scratch_operands = 0 : i64, tpu.core_type = #tpu.core_type<tc>} {
    %c0 = arith.constant 0 : index
    %c0_0 = arith.constant 0 : index
    %0 = vector.load %arg0[%c0, %c0_0] : memref<8x24xf32, #tpu.memory_space<vmem>>, vector<8x24xf32>
    %c0_1 = arith.constant 0 : index
    %c0_2 = arith.constant 0 : index
    %c0_3 = arith.constant 0 : index
    %1 = vector.load %arg1[%c0_1, %c0_2, %c0_3] : memref<3x24x32xf32, #tpu.memory_space<vmem>>, vector<1x24x32xf32>
    %2 = vector.shape_cast %1 : vector<1x24x32xf32> to vector<24x32xf32>
    %cst = arith.constant dense<0.000000e+00> : vector<8x32xf32>
    %3 = tpu.matmul %0, %2, %cst {dimension_numbers = #tpu.dot_dimension_numbers<[1], [0], [0], [1], [0, 0, 1, 1], [], []>} : vector<8x24xf32>, vector<24x32xf32>, vector<8x32xf32> -> vector<8x32xf32>
    %4 = arith.negf %3 : vector<8x32xf32>
    %5 = math.exp %4 : vector<8x32xf32>
    %cst_4 = arith.constant 1.000000e+00 : f32
    %6 = vector.broadcast %cst_4 : f32 to vector<8x32xf32>
    %7 = arith.addf %6, %5 : vector<8x32xf32>
    %8 = arith.divf %6, %7 : vector<8x32xf32>
    %c1 = arith.constant 1 : index
    %c0_5 = arith.constant 0 : index
    %c0_6 = arith.constant 0 : index
    %9 = vector.load %arg1[%c1, %c0_5, %c0_6] : memref<3x24x32xf32, #tpu.memory_space<vmem>>, vector<1x24x32xf32>
    %10 = vector.shape_cast %9 : vector<1x24x32xf32> to vector<24x32xf32>
    %cst_7 = arith.constant dense<0.000000e+00> : vector<8x32xf32>
    %11 = tpu.matmul %0, %10, %cst_7 {dimension_numbers = #tpu.dot_dimension_numbers<[1], [0], [0], [1], [0, 0, 1, 1], [], []>} : vector<8x24xf32>, vector<24x32xf32>, vector<8x32xf32> -> vector<8x32xf32>
    %12 = math.tanh %11 : vector<8x32xf32>
    %c2 = arith.constant 2 : index
    %c0_8 = arith.constant 0 : index
    %c0_9 = arith.constant 0 : index
    %13 = vector.load %arg1[%c2, %c0_8, %c0_9] : memref<3x24x32xf32, #tpu.memory_space<vmem>>, vector<1x24x32xf32>
    %14 = vector.shape_cast %13 : vector<1x24x32xf32> to vector<24x32xf32>
    %cst_10 = arith.constant dense<0.000000e+00> : vector<8x32xf32>
    %15 = tpu.matmul %0, %14, %cst_10 {dimension_numbers = #tpu.dot_dimension_numbers<[1], [0], [0], [1], [0, 0, 1, 1], [], []>} : vector<8x24xf32>, vector<24x32xf32>, vector<8x32xf32> -> vector<8x32xf32>
    %16 = arith.negf %15 : vector<8x32xf32>
    %17 = math.exp %16 : vector<8x32xf32>
    %cst_11 = arith.constant 1.000000e+00 : f32
    %18 = vector.broadcast %cst_11 : f32 to vector<8x32xf32>
    %19 = arith.addf %18, %17 : vector<8x32xf32>
    %20 = arith.divf %18, %19 : vector<8x32xf32>
    %21 = arith.mulf %8, %12 : vector<8x32xf32>
    %22 = math.tanh %21 : vector<8x32xf32>
    %23 = arith.mulf %20, %22 : vector<8x32xf32>
    %c0_12 = arith.constant 0 : index
    %c0_13 = arith.constant 0 : index
    %c0_14 = arith.constant 0 : index
    %24 = vector.load %arg2[%c0_12, %c0_13, %c0_14] : memref<3x32x32xf32, #tpu.memory_space<vmem>>, vector<1x32x32xf32>
    %25 = vector.shape_cast %24 : vector<1x32x32xf32> to vector<32x32xf32>
    %cst_15 = arith.constant dense<0.000000e+00> : vector<8x32xf32>
    %26 = tpu.matmul %23, %25, %cst_15 {dimension_numbers = #tpu.dot_dimension_numbers<[1], [0], [0], [1], [0, 0, 1, 1], [], []>} : vector<8x32xf32>, vector<32x32xf32>, vector<8x32xf32> -> vector<8x32xf32>
    %c0_16 = arith.constant 0 : index
    %c0_17 = arith.constant 0 : index
    %27 = vector.load %arg3[%c0_16, %c0_17] : memref<8x32xf32, #tpu.memory_space<vmem>>, vector<1x32xf32>
    %28 = vector.broadcast %27 : vector<1x32xf32> to vector<8x32xf32>
    %29 = arith.addf %26, %28 : vector<8x32xf32>
    %c1_18 = arith.constant 1 : index
    %c0_19 = arith.constant 0 : index
    %c0_20 = arith.constant 0 : index
    %30 = vector.load %arg2[%c1_18, %c0_19, %c0_20] : memref<3x32x32xf32, #tpu.memory_space<vmem>>, vector<1x32x32xf32>
    %31 = vector.shape_cast %30 : vector<1x32x32xf32> to vector<32x32xf32>
    %cst_21 = arith.constant dense<0.000000e+00> : vector<8x32xf32>
    %32 = tpu.matmul %23, %31, %cst_21 {dimension_numbers = #tpu.dot_dimension_numbers<[1], [0], [0], [1], [0, 0, 1, 1], [], []>} : vector<8x32xf32>, vector<32x32xf32>, vector<8x32xf32> -> vector<8x32xf32>
    %c1_22 = arith.constant 1 : index
    %c0_23 = arith.constant 0 : index
    %33 = vector.load %arg3[%c1_22, %c0_23] : memref<8x32xf32, #tpu.memory_space<vmem>>, vector<1x32xf32>
    %34 = vector.broadcast %33 : vector<1x32xf32> to vector<8x32xf32>
    %35 = arith.addf %32, %34 : vector<8x32xf32>
    %c2_24 = arith.constant 2 : index
    %c0_25 = arith.constant 0 : index
    %c0_26 = arith.constant 0 : index
    %36 = vector.load %arg2[%c2_24, %c0_25, %c0_26] : memref<3x32x32xf32, #tpu.memory_space<vmem>>, vector<1x32x32xf32>
    %37 = vector.shape_cast %36 : vector<1x32x32xf32> to vector<32x32xf32>
    %cst_27 = arith.constant dense<0.000000e+00> : vector<8x32xf32>
    %38 = tpu.matmul %23, %37, %cst_27 {dimension_numbers = #tpu.dot_dimension_numbers<[1], [0], [0], [1], [0, 0, 1, 1], [], []>} : vector<8x32xf32>, vector<32x32xf32>, vector<8x32xf32> -> vector<8x32xf32>
    %c2_28 = arith.constant 2 : index
    %c0_29 = arith.constant 0 : index
    %39 = vector.load %arg3[%c2_28, %c0_29] : memref<8x32xf32, #tpu.memory_space<vmem>>, vector<1x32xf32>
    %40 = vector.broadcast %39 : vector<1x32xf32> to vector<8x32xf32>
    %41 = arith.addf %38, %40 : vector<8x32xf32>
    %cst_30 = arith.constant dense<0.000000e+00> : vector<8x8xf32>
    %42 = tpu.matmul %29, %35, %cst_30 {dimension_numbers = #tpu.dot_dimension_numbers<[1], [1], [0], [0], [0, 0, 1, 0], [], []>} : vector<8x32xf32>, vector<8x32xf32>, vector<8x8xf32> -> vector<8x8xf32>
    %cst_31 = arith.constant dense<0xFF800000> : vector<8xf32>
    %43 = vector.multi_reduction <maximumf>, %42, %cst_31 [1] : vector<8x8xf32> to vector<8xf32>
    %44 = vector.shape_cast %43 : vector<8xf32> to vector<8x1xf32>
    %45 = vector.broadcast %44 : vector<8x1xf32> to vector<8x8xf32>
    %46 = arith.subf %42, %45 : vector<8x8xf32>
    %47 = math.exp %46 : vector<8x8xf32>
    %cst_32 = arith.constant dense<0.000000e+00> : vector<8xf32>
    %48 = vector.multi_reduction <add>, %47, %cst_32 [1] : vector<8x8xf32> to vector<8xf32>
    %49 = vector.shape_cast %48 : vector<8xf32> to vector<8x1xf32>
    %50 = vector.broadcast %49 : vector<8x1xf32> to vector<8x8xf32>
    %51 = arith.divf %47, %50 : vector<8x8xf32>
    %cst_33 = arith.constant dense<0.000000e+00> : vector<8x32xf32>
    %52 = tpu.matmul %51, %41, %cst_33 {dimension_numbers = #tpu.dot_dimension_numbers<[1], [0], [0], [1], [0, 0, 1, 1], [], []>} : vector<8x8xf32>, vector<8x32xf32>, vector<8x32xf32> -> vector<8x32xf32>
    %c0_34 = arith.constant 0 : index
    %c0_35 = arith.constant 0 : index
    %53 = vector.load %arg4[%c0_34, %c0_35] : memref<32x8xf32, #tpu.memory_space<vmem>>, vector<32x8xf32>
    %cst_36 = arith.constant dense<0.000000e+00> : vector<8x8xf32>
    %54 = tpu.matmul %52, %53, %cst_36 {dimension_numbers = #tpu.dot_dimension_numbers<[1], [0], [0], [1], [0, 0, 1, 1], [], []>} : vector<8x32xf32>, vector<32x8xf32>, vector<8x8xf32> -> vector<8x8xf32>
    %c0_37 = arith.constant 0 : index
    %c0_38 = arith.constant 0 : index
    %55 = vector.load %arg5[%c0_37, %c0_38] : memref<1x8xf32, #tpu.memory_space<vmem>>, vector<1x8xf32>
    %56 = vector.broadcast %55 : vector<1x8xf32> to vector<8x8xf32>
    %57 = arith.addf %54, %56 : vector<8x8xf32>
    %c0_39 = arith.constant 0 : index
    %c0_40 = arith.constant 0 : index
    %58 = vector.load %arg6[%c0_39, %c0_40] : memref<8x8xf32, #tpu.memory_space<vmem>>, vector<8x8xf32>
    tpu.vector_store %arg6[%c0_39, %c0_40], %57 {strides = array<i32>} : memref<8x8xf32, #tpu.memory_space<vmem>>, vector<8x8xf32>,
    return
  }
}

</mosaic_0001>

<bundles_post_ra>
// kernel: _forward_impl.1
= control target key start
LH: loop header
LB: loop body
LE: loop exit
PB: predicated region body
PF: predicated region fallthrough
CT: control target
= control target key end

     0   :  { %11 = vsyncpa [#allocation3], 0  ;;  %s583_s0 = inlined_call_operand.vmem [shape: f32[8,24], index: 0, kind: input, shape index: {}]   ;;  %s584_s1 = inlined_call_operand.hbm [shape: f32[3,24,32], index: 1, kind: input, shape index: {}]   ;;  %s585_s2 = inlined_call_operand.hbm [shape: f32[3,32,32], index: 2, kind: input, shape index: {}]   ;;  %s586_s3 = inlined_call_operand.vmem [shape: f32[8,32], index: 3, kind: input, shape index: {}]   ;;  %s587_s4 = inlined_call_operand.vmem [shape: f32[32,8], index: 4, kind: input, shape index: {}]   ;;  %s588_s5 = inlined_call_operand.vmem [shape: f32[1,8], index: 5, kind: input, shape index: {}]   ;;  %s589_s6 = inlined_call_operand.hbm [shape: f32[8,8], index: 6, kind: output, shape index: {}]  }
   0x1   :  { %12 = vsyncpa [#allocation6], 0 }
   0x2   :  { %13 = vsyncpa [#allocation4], 0  ;;  %s20_s23 = sshll.u32 %s584_s1, 4  ;;  %s497_s24 = smov [#allocation2]   ;;  %s21_s23 = int_to_ptr.hbm [resolvable:$true] %s20_s23 }
   0x3   :  { %s22_s25 = sshll.u32 %s497_s24, 4  ;;  %s33_s28 = sshll.u32 %s585_s2, 4  ;;  %s23_s25 = int_to_ptr.vmem [resolvable:$true] %s22_s25  ;;  %s34_s28 = int_to_ptr.hbm [resolvable:$true] %s33_s28 }
   0x4   :  { %s498_s29 = smov 128   ;;  %s499_s30 = smov 8  }
   0x5   :  { %28 = dma.hbm_to_vmem [thread:$0]  %s21_s23, 1152, %s23_s25, [#allocation3], %s498_s29, %s498_s29, %s499_s30  }
   0x6   :  { %s500_s7 = smov [#allocation5]  }
   0x7   :  { %s35_s8 = sshll.u32 %s500_s7, 4  ;;  %s36_s8 = int_to_ptr.vmem [resolvable:$true] %s35_s8 }
   0x8   :  { %41 = dma.hbm_to_vmem [thread:$0]  %s34_s28, 1536, %s36_s8, [#allocation6], %s498_s29, %s498_s29, %s499_s30  }
   0x9   :  { %491 = dma.done.wait [#allocation3], 1152  }
   0xa   :  { %492 = vsyncadd [#allocation3], 4294966144 }
   0xb   :  { %493 = dma.done.wait [#allocation6], 1536  }
   0xc   :  { %494 = vsyncadd [#allocation6], 4294965760  ;;  %v59_v0 = vld [vmem:[#allocation2 + $0x10] sm:$0xff]  ;;  %v131_v1 = vld [vmem:[#allocation2 + $0x40] sm:$0xff]  ;;  %vm60_vm0 = vcmask 195584   ;;  %vm180_vm9 = vcmask 261120  }
   0xd   :  { %v58_v2 = vld [vmem:[#allocation2 + $0x8] sm:$0xff]  ;;  %77 = vmatpush.msra.mxu0 %v59_v0  ;;  %145 = vmatpush.msra.mxu2 %v131_v1  ;;  %v130_v3 = vld [vmem:[#allocation2 + $0x38] sm:$0xff]  ;;  %v57_v4 = vld [vmem:[#allocation2] sm:$0xff]  ;;  %vm284_vm10 = vcmask 64512   ;;  %s501_s23 = smov [#allocation7]   ;;  %s371_s27 = sshll.u32 %s589_s6, 4  ;;  %s372_s27 = int_to_ptr.hbm [resolvable:$true] %s371_s27 }
   0xe   :  { %v129_v5 = vld [vmem:[#allocation2 + $0x30] sm:$0xff]  ;;  %v106_v6 = vld [vmem:[#allocation2 + $0x28] sm:$0xff]  ;;  %v56_v7 = vld [vmem:[%s583_s0] sm:$0xff]  ;;  %s369_s24 = sshll.u32 %s501_s23, 4  ;;  %s370_s24 = int_to_ptr.vmem [resolvable:$true] %s369_s24 }
   0xf   :  { %78 = vmatpush.msra.mxu0 %v58_v2  ;;  %146 = vmatpush.msra.mxu2 %v130_v3  ;;  %v105_v8 = vld [vmem:[#allocation2 + $0x20] sm:$0xff]  ;;  %v104_v9 = vld [vmem:[#allocation2 + $0x18] sm:$0xff]  ;;  %v175_v18 = vld [vmem:[#allocation5 + $0x8] sm:$0xff] }
  0x10   :  { %120 = vmatpush.msra.mxu1 %v106_v6  ;;  %v177_v10 = vld [vmem:[#allocation5 + $0x18] sm:$0xff]  ;;  %v176_v14 = vld [vmem:[#allocation5 + $0x10] sm:$0xff]  ;;  %v206_v19 = vld [vmem:[#allocation5 + $0x28] sm:$0xff] }
  0x11   :  { %79 = vmatpush.msra.mxu0 %v57_v4  ;;  %147 = vmatpush.msra.mxu2 %v129_v5  ;;  %v208_v11 = vld [vmem:[#allocation5 + $0x38] sm:$0xff]  ;;  %v207_v15 = vld [vmem:[#allocation5 + $0x30] sm:$0xff]  ;;  %v233_v20 = vld [vmem:[#allocation5 + $0x48] sm:$0xff] }
  0x12   :  { %382 = vmatmul.msk.f32.vlgmr.msra.gmra.mxu0 %vm60_vm0, %v56_v7  ;;  %385 = vmatmul.msk.f32.vlgmr.msra.gmra.mxu2 %vm60_vm0, %v56_v7  ;;  %v235_v12 = vld [vmem:[#allocation5 + $0x58] sm:$0xff]  ;;  %v234_v16 = vld [vmem:[#allocation5 + $0x50] sm:$0xff]  ;;  %v174_v21 = vld [vmem:[#allocation5] sm:$0xff] }
  0x13   :  { %121 = vmatpush.msra.mxu1 %v105_v8  ;;  %196 = vmatpush.msra.mxu3 %v177_v10  ;;  %v205_v22 = vld [vmem:[#allocation5 + $0x20] sm:$0xff]  ;;  %v399_v55 = vld [vmem:[%s586_s3 + $0x1] ss:$0 sm:$0xff]  ;;  %v400_v56 = vld [vmem:[%s586_s3 + $0x2] ss:$0 sm:$0xff] }
  0x14   :  { %223 = vmatpush.msrb.mxu0 %v208_v11  ;;  %v232_v23 = vld [vmem:[#allocation5 + $0x40] sm:$0xff]  ;;  %v401_v61 = vld [vmem:[%s586_s3] ss:$0 sm:$0xff]  ;;  %v334_v8 = vld [vmem:[%s587_s4 + $0x10] sm:$0xff] }
  0x15   :  { %122 = vmatpush.msra.mxu1 %v104_v9  ;;  %197 = vmatpush.msra.mxu3 %v176_v14  ;;  %v333_v9 = vld [vmem:[%s587_s4 + $0x8] sm:$0xff] }
  0x16   :  { %384 = vmatmul.msk.f32.vlgmr.msra.gmra.mxu1 %vm60_vm0, %v56_v7  ;;  %224 = vmatpush.msrb.mxu0 %v207_v15  ;;  %v335_v7 = vld [vmem:[%s587_s4 + $0x18] sm:$0xff] }
  0x17   :  { %250 = vmatpush.msrb.mxu1 %v235_v12  ;;  %198 = vmatpush.msra.mxu3 %v175_v18 }
  0x18   :  { %225 = vmatpush.msrb.mxu0 %v206_v19 }
  0x19   :  { %251 = vmatpush.msrb.mxu1 %v234_v16  ;;  %199 = vmatpush.msra.mxu3 %v174_v21 }
  0x1a   :  { %226 = vmatpush.msrb.mxu0 %v205_v22  ;;  %v332_v22 = vld [vmem:[%s587_s4] sm:$0xff] }
  0x1b   :  { %252 = vmatpush.msrb.mxu1 %v233_v20 }
  0x1c   :  { %355 = vmatpush.msra.mxu0 %v335_v7 }
  0x1d   :  { %253 = vmatpush.msrb.mxu1 %v232_v23 }
  0x1e   :  { %356 = vmatpush.msra.mxu0 %v334_v8 }
  0x20   :  { %357 = vmatpush.msra.mxu0 %v333_v9 }
  0x22   :  { %358 = vmatpush.msra.mxu0 %v332_v22 }
  0x8f   :  { %v81_v13 = vpop.f32.mrf.mxu0 }
  0x90   :  { %v383_v17 = vmul.f32 -1.442695, %v81_v13 }
  0x92   :  { %403 = vpow2.f32 %v383_v17 }
  0x93   :  { %v124_v30 = vpop.f32.mrf.mxu1 }
  0x95   :  { %v149_v24 = vpop.f32.mrf.mxu2 }
  0x96   :  { %v386_v25 = vmul.f32 -1.442695, %v149_v24  ;;  %v402_v24 = vld [vmem:[%s588_s5] ss:$0 sm:$0xff] }
  0x98   :  { %v404_v26 = vpop.eup %403  ;;  %405 = vpow2.f32 %v386_v25 }
  0x99   :  { %v87_v27 = vadd.f32 1.0, %v404_v26 }
  0x9b   :  { %407 = vrcp.f32 %v87_v27  ;;  %v99_v34 = vand.u32 2147483648, %v87_v27  ;;  %v97_v36 = vand.u32 2147483647, %v87_v27  ;;  %vm93_vm2 = vweird.f32 %v87_v27 }
  0x9d   :  { %v100_v41 = vor.u32 1.1754944e-38, %v99_v34  ;;  %vm98_vm4 = vcmp.eq.f32.partialorder %v97_v36, 8.507059e+37 }
  0x9e   :  { %v406_v28 = vpop.eup %405 }
  0x9f   :  { %v155_v29 = vadd.f32 1.0, %v406_v28 }
  0xa1   :  { %v408_v31 = vpop.eup %407  ;;  %409 = vrcp.f32 %v155_v29  ;;  %v167_v48 = vand.u32 2147483648, %v155_v29  ;;  %vm161_vm6 = vweird.f32 %v155_v29  ;;  %v165_v49 = vand.u32 2147483647, %v155_v29 }
  0xa2   :  { %v89_v32 = vmul.f32 %v408_v31, %v87_v27  ;;  %411 = vtanh.f32 %v124_v30  ;;  %vm94_vm1 = vweird.f32 %v408_v31 }
  0xa3   :  { %vm95_vm3 = vmor %vm93_vm2, %vm94_vm1  ;;  %v168_v51 = vor.u32 1.1754944e-38, %v167_v48  ;;  %vm166_vm8 = vcmp.eq.f32.partialorder %v165_v49, 8.507059e+37 }
  0xa4   :  { %v90_v33 = vsub.f32 1.0, %v89_v32 }
  0xa6   :  { %v91_v35 = vmul.f32 %v408_v31, %v90_v33 }
  0xa7   :  { %v410_v37 = vpop.eup %409 }
  0xa8   :  { %v157_v38 = vmul.f32 %v410_v37, %v155_v29  ;;  %v92_v39 = vadd.f32 %v408_v31, %v91_v35  ;;  %v412_v40 = vpop.eup %411  ;;  %vm162_vm5 = vweird.f32 %v410_v37 }
  0xa9   :  { %vm163_vm7 = vmor %vm161_vm6, %vm162_vm5 }
  0xaa   :  { %v96_v42 = vsel %vm95_vm3, %v408_v31, %v92_v39  ;;  %v158_v43 = vsub.f32 1.0, %v157_v38 }
  0xab   :  { %v101_v44 = vsel %vm98_vm4, %v100_v41, %v96_v42 }
  0xac   :  { %v171_v45 = vmul.f32 %v412_v40, %v101_v44  ;;  %v159_v46 = vmul.f32 %v410_v37, %v158_v43 }
  0xae   :  { %413 = vtanh.f32 %v171_v45  ;;  %v160_v47 = vadd.f32 %v410_v37, %v159_v46 }
  0xb0   :  { %v164_v50 = vsel %vm163_vm7, %v410_v37, %v160_v47 }
  0xb1   :  { %v169_v53 = vsel %vm166_vm8, %v168_v51, %v164_v50 }
  0xb4   :  { %v414_v52 = vpop.eup %413 }
  0xb5   :  { %v173_v54 = vmul.f32 %v414_v52, %v169_v53 }
  0xb7   :  { %387 = vmatmul.msk.f32.vlgmr.msra.gmra.mxu3 %vm180_vm9, %v173_v54  ;;  %388 = vmatmul.msk.f32.vlgmr.msrb.gmra.mxu0 %vm180_vm9, %v173_v54 }
  0xb8   :  { %389 = vmatmul.msk.f32.vlgmr.msrb.gmra.mxu1 %vm180_vm9, %v173_v54 }
 0x134   :  { %v228_v57 = vpop.f32.mrf.mxu0 }
 0x135   :  { %v229_v58 = vadd.f32 %v399_v55, %v228_v57  ;;  %v255_v59 = vpop.f32.mrf.mxu1 }
 0x136   :  { %v256_v60 = vadd.f32 %v400_v56, %v255_v59 }
 0x137   :  { %390 = vmatpush.xpose.msk.msrb.mxu2 %vm180_vm9, %v229_v58 }
 0x138   :  { %327 = vmatpush.msrb.mxu3 %v256_v60 }
 0x13a   :  { %v201_v62 = vpop.f32.mrf.mxu3 }
 0x13b   :  { %v202_v63 = vadd.f32 %v401_v61, %v201_v62 }
 0x13d   :  { %391 = vmatmul.msk.f32.vlgmr.msrb.gmra.mxu2 %vm180_vm9, %v202_v63 }
 0x1c0   :  { %v281_v0 = vpop.f32.mrf.mxu2 }
 0x1c1   :  { %v285_v1 = vsel %vm284_vm10, %v281_v0, -inf }
 0x1c2   :  { %286 = vmax.xlane.f32.xlu0 %v285_v1 }
 0x235   :  { %v287_v2 = vpop.xlane.xlu0 %286 }
 0x236   :  { %v288_v3 = vsub.f32 %v281_v0, %v287_v2 }
 0x238   :  { %v289_v4 = vmul.f32 1.442695, %v288_v3 }
 0x23a   :  { %415 = vpow2.f32 %v289_v4 }
 0x240   :  { %v416_v5 = vpop.eup %415 }
 0x241   :  { %v291_v6 = vsel %vm284_vm10, %v416_v5, 0.0 }
 0x242   :  { %292 = vadd.xlane.f32.xlu0 %v291_v6 }
 0x2b5   :  { %v293_v10 = vpop.xlane.xlu0 %292 }
 0x2b6   :  { %417 = vrcp.f32 %v293_v10  ;;  %v305_v14 = vand.u32 2147483648, %v293_v10  ;;  %v303_v16 = vand.u32 2147483647, %v293_v10  ;;  %vm299_vm12 = vweird.f32 %v293_v10 }
 0x2b8   :  { %v306_v18 = vor.u32 1.1754944e-38, %v305_v14  ;;  %vm304_vm14 = vcmp.eq.f32.partialorder %v303_v16, 8.507059e+37 }
 0x2bc   :  { %v418_v11 = vpop.eup %417 }
 0x2bd   :  { %v295_v12 = vmul.f32 %v418_v11, %v293_v10  ;;  %vm300_vm11 = vweird.f32 %v418_v11 }
 0x2be   :  { %vm301_vm13 = vmor %vm299_vm12, %vm300_vm11 }
 0x2bf   :  { %v296_v13 = vsub.f32 1.0, %v295_v12 }
 0x2c1   :  { %v297_v15 = vmul.f32 %v418_v11, %v296_v13 }
 0x2c3   :  { %v298_v17 = vadd.f32 %v418_v11, %v297_v15 }
 0x2c5   :  { %v302_v19 = vsel %vm301_vm13, %v418_v11, %v298_v17 }
 0x2c6   :  { %v307_v20 = vsel %vm304_vm14, %v306_v18, %v302_v19 }
 0x2c7   :  { %v308_v21 = vmul.f32 %v416_v5, %v307_v20 }
 0x2c9   :  { %392 = vmatmul.msk.f32.vlgmr.msrb.gmra.mxu3 %vm284_vm10, %v308_v21 }
 0x34c   :  { %v329_v23 = vpop.f32.mrf.mxu3 }
 0x34d   :  { %393 = vmatmul.msk.f32.vlgmr.msra.gmra.mxu0 %vm180_vm9, %v329_v23 }
 0x3ca   :  { %v360_v25 = vpop.f32.mrf.mxu0 }
 0x3cb   :  { %v361_v26 = vadd.f32 %v402_v24, %v360_v25 }
 0x3cd   :  { %363 = vst.msk [vmem:[#allocation7] sm:$0xff] %vm284_vm10, %v361_v26 }
 0x3ce   :  { %374 = dma.vmem_to_hbm [thread:$0]  %s370_s24, 128, %s372_s27, [#allocation4]  }
 0x3cf   :  { %495 = dma.done.wait [#allocation4], 128  }
 0x3d0   :  { %496 = vsyncadd [#allocation4], 4294967168 }
 0x3d1   :  { %379 = vsyncpa [#allocation3], 1 }
 0x3d2   :  { %380 = vsyncpa [#allocation6], 1 }
 0x3d3   :  { %381 = vsyncpa [#allocation4], 1 }

</bundles_post_ra>
